<compile_context>
chip_gen: v6e
topology: v6e:2x2x1
jax: 0.10.0
libtpu: 0.0.40
codegen_flags: <defaults>
</compile_context>

<pallas_src>
import math

import jax
import jax.numpy as jnp
from jax.experimental import pallas as pl
from jax.experimental.pallas import tpu as pltpu

_LANE = 128     # vreg lane width (minor dim)
_SUB = 8        # vreg sublane count (second-minor dim)
_MAX_TM = 2048  # max rows per grid block -> 2048*128*4B = 1 MiB input tile


def _fused_sqnorm_kernel(wid_ref, x_ref, o_ref, acc_ref):
    """One grid step = one (tm, 128) block of the packed weight buffer.

    wid_ref : SMEM int32[(num_blocks + 1,)]  block -> weight id (sentinel last)
    x_ref   : VMEM f32[(tm, 128)]            current block of packed weights
    o_ref   : VMEM f32[(8, 128)]             output tile of the current weight
    acc_ref : VMEM f32[(tm, 128)]            running elementwise sum of squares
    """
    i = pl.program_id(0)
    w = wid_ref[i]

    prev_w = wid_ref[jnp.maximum(i, 1) - 1]           # clamp keeps i==0 in-bounds
    is_first = jnp.logical_or(i == 0, prev_w != w)    # first block of this weight
    is_last = wid_ref[i + 1] != w                     # sentinel makes i+1 safe

    @pl.when(is_first)
    def _():
        acc_ref[...] = jnp.zeros_like(acc_ref)

    x = x_ref[...].astype(jnp.float32)
    acc_ref[...] += x * x        # pure VPU FMA; no cross-lane work in the hot loop

    @pl.when(is_last)
    def _():
        # Single cross-lane/sublane reduction per weight (epilogue only),
        # broadcast into the lane-dense (8, 128) output tile for this weight.
        ssum = jnp.sum(acc_ref[...])
        o_ref[...] = jnp.zeros(o_ref.shape, o_ref.dtype) + ssum


def _pack_weights(weights, max_tm):
    """Flatten + zero-pad every weight into one lane-dense (rows, 128) buffer."""
    sizes = [int(math.prod(w.shape)) for w in weights]
    rows = [max(_SUB, -(-s // _LANE)) for s in sizes]
    rows = [-(-r // _SUB) * _SUB for r in rows]
    tm = min(max_tm, max(rows))
    tm = -(-tm // _SUB) * _SUB

    parts, wid = [], []
    for k, (w, s) in enumerate(zip(weights, sizes)):
        nblk = -(-s // (tm * _LANE))                  # blocks for this weight
        flat = jnp.ravel(w).astype(jnp.float32)
        flat = jnp.pad(flat, (0, nblk * tm * _LANE - s))   # zeros: no effect on sumsq
        parts.append(flat.reshape(nblk * tm, _LANE))
        wid.extend([k] * nblk)

    packed = jnp.concatenate(parts, axis=0)
    wid_tbl = jnp.asarray(wid + [-1], dtype=jnp.int32)      # sentinel at the end
    return packed, wid_tbl, tm, len(wid)


def fused_frobenius_sumsq(weights, *, max_tm=_MAX_TM):
    """Per-weight sum-of-squares for all weights in ONE pallas_call.

    Returns a (num_weights,) float32 vector of sum_i(w_i**2).
    """
    packed, wid_tbl, tm, num_blocks = _pack_weights(weights, max_tm)
    n_w = len(weights)

    out = pl.pallas_call(
        _fused_sqnorm_kernel,
        out_shape=jax.ShapeDtypeStruct((n_w * _SUB, _LANE), jnp.float32),
        grid_spec=pltpu.PrefetchScalarGridSpec(
            num_scalar_prefetch=1,
            grid=(num_blocks,),
            in_specs=[pl.BlockSpec((tm, _LANE), lambda i, wid: (i, 0))],
            # Output block chosen by the prefetched weight-id table (P2 pattern);
            # consecutive blocks of one weight revisit the same output tile.
            out_specs=pl.BlockSpec((_SUB, _LANE), lambda i, wid: (wid[i], 0)),
            scratch_shapes=[pltpu.VMEM((tm, _LANE), jnp.float32)],
        ),
        compiler_params=pltpu.CompilerParams(
            dimension_semantics=("arbitrary",),
        ),
    )(wid_tbl, packed)

    return out[::_SUB, 0]        # (n_w,) per-weight sum of squares


def regularization_forward(weight_list, gamma=0.01):
    """Equivalent of Regularization.forward / regulation_loss (p=2)."""
    if gamma <= 0:
        raise ValueError("param weight_decay can not be <= 0")
    weights = [w for _name, w in weight_list]
    sumsq = fused_frobenius_sumsq(weights)
    # sqrt + cross-weight sum + gamma scaling: tiny, stays in JAX glue.
    return jnp.float32(gamma) * jnp.sum(jnp.sqrt(sumsq))


def _make_sdne_like_weights(key):
    """Deterministic stand-in for SDNE's named 'weight' parameters."""
    node_size, h1, h2 = 16, 32, 8
    shapes = [
        ("encoder.0.weight", (h1, node_size)),
        ("encoder.2.weight", (h2, h1)),
        ("decoder.0.weight", (h1, h2)),
        ("decoder.2.weight", (node_size, h1)),
    ]
    weight_list = []
    for name, shape in shapes:
        key, sub = jax.random.split(key)
        weight_list.append((name, jax.random.normal(sub, shape, dtype=jnp.float32)))
    return weight_list


if __name__ == "__main__":
    key = jax.random.PRNGKey(0)
    weight_list = _make_sdne_like_weights(key)
    gamma = 0.01

    reg_loss = regularization_forward(weight_list, gamma=gamma)
    reg_loss = jax.block_until_ready(reg_loss)

    # Pure-JAX reference: gamma * sum of Frobenius norms.
    ref = jnp.float32(gamma) * sum(
        jnp.sqrt(jnp.sum(w.astype(jnp.float32) ** 2)) for _n, w in weight_list
    )
    assert jnp.allclose(reg_loss, ref, rtol=1e-5, atol=1e-6), (reg_loss, ref)

    # Extra check: force tiny row tiles so one weight spans several grid blocks
    # (exercises the segmented accumulate / per-weight epilogue path).
    key, sub = jax.random.split(key)
    big = jax.random.normal(sub, (32, 64), dtype=jnp.float32)  # 2048 elems -> 2 blocks
    weights2 = [w for _n, w in weight_list] + [big]
    sumsq2 = jax.block_until_ready(fused_frobenius_sumsq(weights2, max_tm=8))
    ref2 = jnp.stack([jnp.sum(w.astype(jnp.float32) ** 2) for w in weights2])
    assert jnp.allclose(sumsq2, ref2, rtol=1e-5, atol=1e-6), (sumsq2, ref2)

    print("KERNEL_OK")
</pallas_src>

<mosaic_0001>
module attributes {stable_mosaic.version = 11 : i64} {
  func.func @_fused_sqnorm_kernel(%arg0: i32, %arg1: memref<5xi32, #tpu.memory_space<smem>>, %arg2: memref<8x128xf32, #tpu.memory_space<vmem>>, %arg3: memref<8x128xf32, #tpu.memory_space<vmem>>, %arg4: memref<8x128xf32, #tpu.memory_space<vmem>>) attributes {dimension_semantics = [#tpu.dimension_semantics<arbitrary>], iteration_bounds = array<i64: 4>, scalar_prefetch = 1 : i64, scratch_operands = 1 : i64, tpu.core_type = #tpu.core_type<tc>, window_params = [{transform_indices = @transform_0, window_bounds = array<i64: 8, 128>}, {transform_indices = @transform_1, window_bounds = array<i64: 8, 128>}]} {
    %0 = arith.index_cast %arg0 : i32 to index
    %1 = memref.load %arg1[%0] : memref<5xi32, #tpu.memory_space<smem>>
    %c1_i32 = arith.constant 1 : i32
    %2 = arith.maxsi %arg0, %c1_i32 : i32
    %c1_i32_0 = arith.constant 1 : i32
    %3 = arith.subi %2, %c1_i32_0 : i32
    %4 = arith.index_cast %3 : i32 to index
    %5 = memref.load %arg1[%4] : memref<5xi32, #tpu.memory_space<smem>>
    %c0_i32 = arith.constant 0 : i32
    %6 = arith.cmpi eq, %arg0, %c0_i32 : i32
    %7 = arith.cmpi ne, %5, %1 : i32
    %8 = arith.ori %6, %7 : i1
    %c1_i32_1 = arith.constant 1 : i32
    %9 = arith.addi %arg0, %c1_i32_1 : i32
    %10 = arith.index_cast %9 : i32 to index
    %11 = memref.load %arg1[%10] : memref<5xi32, #tpu.memory_space<smem>>
    %12 = arith.cmpi ne, %11, %1 : i32
    %13 = arith.extui %8 : i1 to i32
    %c0_i32_2 = arith.constant 0 : i32
    %14 = arith.cmpi ne, %13, %c0_i32_2 : i32
    scf.if %14 {
      %cst = arith.constant 0.000000e+00 : f32
      %22 = vector.broadcast %cst : f32 to vector<8x128xf32>
      %c0_9 = arith.constant 0 : index
      %c0_10 = arith.constant 0 : index
      %23 = vector.load %arg4[%c0_9, %c0_10] : memref<8x128xf32, #tpu.memory_space<vmem>>, vector<8x128xf32>
      tpu.vector_store %arg4[%c0_9, %c0_10], %22 {strides = array<i32>} : memref<8x128xf32, #tpu.memory_space<vmem>>, vector<8x128xf32>,
    } else {
    }
    %c0 = arith.constant 0 : index
    %c0_3 = arith.constant 0 : index
    %15 = vector.load %arg2[%c0, %c0_3] : memref<8x128xf32, #tpu.memory_space<vmem>>, vector<8x128xf32>
    %c0_4 = arith.constant 0 : index
    %c0_5 = arith.constant 0 : index
    %16 = vector.load %arg4[%c0_4, %c0_5] : memref<8x128xf32, #tpu.memory_space<vmem>>, vector<8x128xf32>
    %17 = arith.mulf %15, %15 : vector<8x128xf32>
    %18 = arith.addf %16, %17 : vector<8x128xf32>
    %c0_6 = arith.constant 0 : index
    %c0_7 = arith.constant 0 : index
    %19 = vector.load %arg4[%c0_6, %c0_7] : memref<8x128xf32, #tpu.memory_space<vmem>>, vector<8x128xf32>
    tpu.vector_store %arg4[%c0_6, %c0_7], %18 {strides = array<i32>} : memref<8x128xf32, #tpu.memory_space<vmem>>, vector<8x128xf32>,
    %20 = arith.extui %12 : i1 to i32
    %c0_i32_8 = arith.constant 0 : i32
    %21 = arith.cmpi ne, %20, %c0_i32_8 : i32
    scf.if %21 {
      %c0_9 = arith.constant 0 : index
      %c0_10 = arith.constant 0 : index
      %22 = vector.load %arg4[%c0_9, %c0_10] : memref<8x128xf32, #tpu.memory_space<vmem>>, vector<8x128xf32>
      %23 = vector.shape_cast %22 : vector<8x128xf32> to vector<1x8x128xf32>
      %cst = arith.constant dense<0.000000e+00> : vector<1xf32>
      %24 = vector.multi_reduction <add>, %23, %cst [1, 2] : vector<1x8x128xf32> to vector<1xf32>
      %25 = vector.shape_cast %24 : vector<1xf32> to vector<1x1x1xf32>
      %26 = vector.extract %25[0, 0, 0] : f32 from vector<1x1x1xf32>
      %cst_11 = arith.constant 0.000000e+00 : f32
      %27 = vector.broadcast %cst_11 : f32 to vector<8x128xf32>
      %28 = vector.broadcast %26 : f32 to vector<8x128xf32>
      %29 = arith.addf %27, %28 : vector<8x128xf32>
      %c0_12 = arith.constant 0 : index
      %c0_13 = arith.constant 0 : index
      %30 = vector.load %arg3[%c0_12, %c0_13] : memref<8x128xf32, #tpu.memory_space<vmem>>, vector<8x128xf32>
      tpu.vector_store %arg3[%c0_12, %c0_13], %29 {strides = array<i32>} : memref<8x128xf32, #tpu.memory_space<vmem>>, vector<8x128xf32>,
    } else {
    }
    return
  }
  func.func @transform_0(%arg0: i32, %arg1: memref<5xi32, #tpu.memory_space<smem>>) -> (i32, i32) {
    %c0_i32 = arith.constant 0 : i32
    %c0_i32_0 = arith.constant 0 : i32
    return %arg0, %c0_i32 : i32, i32
  }
  func.func @transform_1(%arg0: i32, %arg1: memref<5xi32, #tpu.memory_space<smem>>) -> (i32, i32) {
    %0 = arith.index_cast %arg0 : i32 to index
    %1 = memref.load %arg1[%0] : memref<5xi32, #tpu.memory_space<smem>>
    %c0_i32 = arith.constant 0 : i32
    %c0_i32_0 = arith.constant 0 : i32
    return %1, %c0_i32 : i32, i32
  }
}

</mosaic_0001>

<bundles_post_ra>
// kernel: tpu_custom_call.1
= control target key start
LH: loop header
LB: loop body
LE: loop exit
PB: predicated region body
PF: predicated region fallthrough
CT: control target
= control target key end

     0   :  { %s479_s9 = smov [#allocation4]   ;;  %s690_s0 = inlined_call_operand.hbm [shape: s32[5], index: 0, kind: input, shape index: {}]   ;;  %s691_s1 = inlined_call_operand.hbm [shape: f32[32,128], index: 1, kind: input, shape index: {}]   ;;  %s692_s2 = inlined_call_operand.hbm [shape: f32[32,128], index: 2, kind: output, shape index: {}]  }
   0x1   :  { %8 = dma.hbm_to_smem %s690_s0, 16, %s479_s9, [#allocation3] }
   0x2   :  { %441 = dma.done.wait [#allocation3], 16 }
   0x3   :  { %442 = vsyncadd [#allocation3], 4294967280 }
   0x4   :  { %10 = sfence }
   0x5   :  { %11 = vsyncpa [#allocation6], 0 }
   0x6   :  { %13 = vsyncpa [#allocation6 + $0x1], 0 }
   0x7   :  { %14 = vsyncpa [#allocation7], 0 }
   0x8   :  { %16 = vsyncpa [#allocation7 + $0x1], 0  ;;  %s501_s12 = smov 0   ;;  %s503_s13 = smov 0  }
   0x9   :  { %s505_s14 = smov 0   ;;  %s507_s15 = smov 0  }
   0xa   :  { %s509_s16 = smov 0   ;;  %s511_s17 = smov 0  }
   0xb   :  { %s513_s0 = smov 0  }
   0xc LB: > { %s535_s18 = sadd.s32 4294967295, %s477_s0   ;;  %s261_s19 = sadd.s32 4294967294, %s477_s0   ;;  %s477_s0 = sphi %s513_s0, %s713_s0   ;;  %s473_s17 = sphi %s511_s17, %s712_s17   ;;  %s469_s16 = sphi %s509_s16, %s711_s16   ;;  %s465_s15 = sphi %s507_s15, %s710_s15   ;;  %s461_s14 = sphi %s505_s14, %s709_s14   ;;  %s457_s13 = sphi %s503_s13, %s708_s13   ;;  %s453_s12 = sphi %s501_s12, %s707_s12  }
   0xd   : > { %s539_s20 = sadd.s32 1, %s477_s0   ;;  %s29_s21 = sadd.s32 1, %s473_s17 }
   0xe   : > { %s26_s22 = ssub.s32 %s477_s0, %s539_s20  ;;  %p36_p0 = scmp.ne.s32.totalorder %s473_s17, %s469_s16 }
   0xf   : > { %p27_p1 = scmp.eq.s32.totalorder %s26_s22, 0  ;;  %p37_p2 = scmp.eq.s32.totalorder %s477_s0, 0 }
  0x10   : > { %p42_p3 = scmp.ne.s32.totalorder %s469_s16, %s465_s15  ;;  %p693_p4 = scmp.eq.s32.totalorder %s535_s18, 0 }
  0x11   : > { %s550_s23 = scalar_select %p27_p1, %s473_s17, %s29_s21  }
  0x12   : > { %p552_p5 = por %p37_p2, %p36_p0  ;;  %p558_p6 = por %p693_p4, %p42_p3 }
  0x13   : > { %s52_s26 = sld [smem:[#allocation4 + %s477_s0]]  ;;  %s57_s27 = sadd.s32 1, %s461_s14 }
  0x14   : > { %s697_s25 = scalar_select %p558_p6, 1, 0 }
  0x15   : > { %s53_s28 = sld [smem:[#allocation4 + %s539_s20]]  ;;  %p67_p7 = scmp.ne.s32.totalorder %s461_s14, %s457_s13 }
  0x16   : > { %p68_p8 = scmp.eq.s32.totalorder %s535_s18, 3  ;;  %p73_p9 = scmp.ne.s32.totalorder %s457_s13, %s453_s12 }
  0x17   : > { %p74_p10 = scmp.eq.s32.totalorder %s261_s19, 3  ;;  %p291_p12 = scmp.lt.s32.totalorder %s477_s0, 4 }
  0x18   : > { %p570_p11 = por %p68_p8, %p67_p7  ;;  %s94_s3 = sand.u32 1, %s473_s17  }
  0x19   : > { %p575_p13 = por %p74_p10, %p73_p9  ;;  %s264_s4 = sshll.u32 %s94_s3, 3 }
  0x1a   : > { %s698_s29 = scalar_select %p570_p11, 1, 0 }
  0x1b   : > { %s699_s30 = scalar_select %p575_p13, 1, 0 }
  0x1c   : > { %s54_s5 = ssub.s32 %s52_s26, %s53_s28  ;;  %s265_s6 = sshll.u32 %s477_s0, 7 }
  0x1d   : > { %p55_p0 = scmp.eq.s32.totalorder %s54_s5, 0  ;;  %s584_s9 = scalar_lea.hbm %s691_s1, %s265_s6 }
  0x1e   : > { %s98_s10 = scalar_lea.vmem [#allocation5], %s264_s4  ;;  %p593_p1 = pnand %p291_p12, %p552_p5 }
  0x1f   : > { %s105_s11 = sshll.u32 %s98_s10, 4  ;;  %s95_s21 = scalar_lea.sflag [#allocation6], %s94_s3  ;;  %s589_s11 = int_to_ptr.vmem [resolvable:$true] %s105_s11 }
  0x20   : > { %s587_s15 = scalar_select %p55_p0, %s461_s14, %s57_s27  }
  0x21   : > { %s359_s22 = scalar_lea.hbm %s584_s9, 128  ;;  %p361_p8 = pneg %p593_p1 }
  0x22   : > { %p360_p7 = scmp.ne.s32.totalorder %s584_s9, %s359_s22  ;;  %s364_s28 = scalar_lea.hbm %s691_s1, 512 }
  0x23   : > { %p365_p5 = scmp.lt.s32.totalorder %s584_s9, %s691_s1  ;;  %p366_p12 = scmp.lt.s32.totalorder %s364_s28, %s359_s22 }
  0x24   : > { %p362_p9 = pnand %p361_p8, %p360_p7 }
  0x25   : > { %p367_p0 = por %p366_p12, %p365_p5 }
  0x26   : > { %p363_p10 = pneg %p362_p9 }
  0x28   : > { %p368_p4 = pnand %p367_p0, %p363_p10 }
  0x2a   : > { %371 = shalt.err (!%p368_p4)
}
  0x2b   : > { %s372_s3 = scalar_lea.vmem %s589_s11, 128  ;;  %s480_s5 = smov [#allocation5]  }
  0x2c   : > { %p373_p2 = scmp.ne.s32.totalorder %s589_s11, %s372_s3  ;;  %s377_s6 = sshll.u32 %s480_s5, 4  ;;  %s378_s6 = int_to_ptr.vmem [resolvable:$false] %s377_s6 }
  0x2d   : > { %s379_s7 = scalar_lea.vmem %s378_s6, 256  ;;  %p380_p9 = scmp.lt.s32.totalorder %s589_s11, %s378_s6 }
  0x2e   : > { %p375_p3 = pnand %p373_p2, %p361_p8  ;;  %p381_p13 = scmp.lt.s32.totalorder %s379_s7, %s372_s3 }
  0x30   : > { %p376_p7 = pneg %p375_p3  ;;  %p382_p11 = por %p381_p13, %p380_p9 }
  0x32   : > { %p383_p6 = pnand %p382_p11, %p376_p7 }
  0x34   : > { %386 = shalt.err (!%p383_p6)
}
  0x35   : > { %286 = dma.hbm_to_vmem [thread:$0]  (!%p593_p1), %s584_s9, 128, %s589_s11, %s95_s21  }
  0x36   : > { %p701_p4 = scmp.lt.s32.totalorder %s477_s0, 5  ;;  %p702_p10 = scmp.ge.s32.totalorder %s477_s0, 1 }
  0x38   : > { %p111_p2 = pnand %p702_p10, %p701_p4 }
  0x39   : > { %s116_s8 = sand.u32 (!%p111_p2), 1, %s469_s16   ;;  %p703_p13 = scmp.ne.s32.totalorder (!%p111_p2), %s697_s25, 0 }
  0x3a   : > { %114 = sbr.rel (%p111_p2) target bundleno = 324 (0x144), region = 24  ;;  %s267_s10 = sshll.u32 (!%p111_p2), %s116_s8, 3 }
  0x3b   : > { %s117_s22 = scalar_lea.sflag (!%p111_p2), [#allocation6], %s116_s8  ;;  %s120_s26 = scalar_lea.vmem (!%p111_p2), [#allocation5], %s267_s10 }
  0x3f   : > { %444 = dma.done.wait (%p703_p13), %s117_s22, 128  }
  0x40   : > { %446 = vsyncadd (%p703_p13), %s117_s22, 4294967168  ;;  %p141_p6 = scmp.gt.s32.totalorder %s535_s18, 1  ;;  %s148_s9 = sadd.s32 1, %s535_s18 }
  0x41   : > { %s140_s11 = sld [smem:[#allocation4 + %s535_s18]]  ;;  %s136_s19 = sand.u32 1, %s457_s13  }
  0x42   : > { %s142_s21 = scalar_select %p141_p6, %s535_s18, 1 }
  0x43   : > { %s149_s27 = sld [smem:[#allocation4 + %s148_s9]]  ;;  %s633_s28 = sshll.u32 %s136_s19, 3 }
  0x44   : > { %s269_s4 = sadd.s32 4294967295, %s142_s21  ;;  %p704_p1 = scmp.eq.s32.totalorder %s535_s18, 0 }
  0x45   : > { %s144_s25 = sld [smem:[#allocation4 + %s269_s4]]  ;;  %s138_s24 = scalar_lea.vmem [#allocation8], %s633_s28 }
  0x4b   : > { %p146_p11 = scmp.ne.s32.totalorder %s144_s25, %s140_s11 }
  0x4d   : > { %p147_p3 = por %p146_p11, %p704_p1 }
  0x4e   : > { %v481_v0 = vmov (%p147_p3), 0.0  }
  0x4f   : > { %153 = sbr.rel (!%p147_p3) target bundleno = 84 (0x54), region = 32  ;;  %154 = vst [vmem:[#allocation2] sm:$0xff] (%p147_p3), %v481_v0 }
  0x54 PF: > { %v155_v1 = vld [vmem:[%s120_s26] sm:$0xff]  ;;  %p270_p8 = scmp.eq.s32.totalorder %s149_s27, %s140_s11 }
  0x55   : > { %v157_v3 = vmul.f32 %v155_v1, %v155_v1 }
  0x56   : > { %v156_v2 = vld [vmem:[#allocation2] sm:$0xff]  ;;  %162 = sbr.rel (%p270_p8) target bundleno = 299 (0x12b), region = 36 }
  0x57   : > { %v158_v4 = vadd.f32 %v157_v3, %v156_v2 }
  0x59   : > { %159 = vst [vmem:[#allocation2] sm:$0xff] %v158_v4 }
  0x60   : > { %v163_v5 = vld [vmem:[#allocation2] sm:$0xff] }
  0x61   : > { %164 = vadd.xlane.f32.xlu0 %v163_v5 }
  0xea   : > { %v165_v6 = vpop.xlane.xlu0 %164 }
  0xeb   : > { %v166_v7 = vrot.slane %v165_v6, 4 }
  0xed   : > { %v167_v8 = vadd.f32 %v166_v7, %v165_v6 }
  0xef   : > { %v168_v9 = vrot.slane %v167_v8, 2 }
  0xf1   : > { %v169_v10 = vadd.f32 %v168_v9, %v167_v8 }
  0xf3   : > { %v170_v11 = vrot.slane %v169_v10, 1 }
  0xf5   : > { %v171_v12 = vadd.f32 %v170_v11, %v169_v10 }
  0xf7   : > { %275 = vpush %v171_v12 }
 0x128   : > { %s276_s3 = spop %275 }
 0x129   : > { %v173_v13 = vstv %s276_s3 }
 0x12a   : > { %175 = vst [vmem:[%s138_s24] sm:$0xff] %v173_v13 }
 0x12b PF: > { %p705_p5 = scmp.ne.s32.totalorder %s698_s29, 0  ;;  %s191_s7 = sshll.u32 %s138_s24, 4  ;;  %s192_s7 = int_to_ptr.vmem [resolvable:$true] %s191_s7 }
 0x12c   : > { %s177_s9 = scalar_lea.sflag [#allocation7], %s136_s19  ;;  %s387_s11 = scalar_lea.vmem %s192_s7, 128 }
 0x12d   : > { %s279_s5 = scalar_select %p705_p5, [#allocation4], [#allocation9] }
 0x12e   : > { %s715_s18 = smov (!%p705_p5, %s535_s18), 0  ;;  %p388_p12 = scmp.ne.s32.totalorder %s192_s7, %s387_s11 }
 0x12f   : > { %s184_s6 = sld [smem:[%s279_s5 + %s715_s18]]  ;;  %s482_s21 = smov [#allocation8]  }
 0x130   : > { %p389_p0 = pnand %p388_p12, %p705_p5  ;;  %s391_s27 = sshll.u32 %s482_s21, 4  ;;  %s392_s27 = int_to_ptr.vmem [resolvable:$false] %s391_s27 }
 0x131   : > { %s393_s4 = scalar_lea.vmem %s392_s27, 256  ;;  %p394_p9 = scmp.lt.s32.totalorder %s192_s7, %s392_s27 }
 0x132   : > { %p390_p7 = pneg %p389_p0  ;;  %p395_p4 = scmp.lt.s32.totalorder %s393_s4, %s387_s11 }
 0x134   : > { %p396_p10 = por %p395_p4, %p394_p9 }
 0x135   : > { %s272_s8 = sshll.u32 %s184_s6, 7 }
 0x136   : > { %s189_s26 = scalar_lea.hbm %s692_s2, %s272_s8  ;;  %p397_p2 = pnand %p396_p10, %p390_p7 }
 0x138   : > { %400 = shalt.err (!%p397_p2)
}
 0x139   : > { %s401_s18 = scalar_lea.hbm %s189_s26, 128  ;;  %s405_s25 = scalar_lea.hbm %s692_s2, 512 }
 0x13a   : > { %p402_p13 = scmp.ne.s32.totalorder %s189_s26, %s401_s18  ;;  %p406_p1 = scmp.lt.s32.totalorder %s189_s26, %s692_s2 }
 0x13b   : > { %p407_p3 = scmp.lt.s32.totalorder %s405_s25, %s401_s18 }
 0x13c   : > { %p403_p6 = pnand %p402_p13, %p705_p5 }
 0x13d   : > { %p408_p8 = por %p407_p3, %p406_p1 }
 0x13e   : > { %p404_p11 = pneg %p403_p6 }
 0x140   : > { %p409_p12 = pnand %p408_p8, %p404_p11 }
 0x142   : > { %412 = shalt.err (!%p409_p12)
}
 0x143   : > { %281 = dma.vmem_to_hbm [thread:$0]  (%p705_p5), %s192_s7, 128, %s189_s26, %s177_s9  }
 0x144 PF: > { %p292_p0 = scmp.ge.s32.totalorder %s477_s0, 2  ;;  %s203_s5 = sand.u32 1, %s453_s12  }
 0x145   : > { %p706_p7 = scmp.ne.s32.totalorder %s699_s30, 0  ;;  %s204_s6 = scalar_lea.sflag [#allocation7], %s203_s5 }
 0x147   : > { %p288_p9 = pnand %p292_p0, %p706_p7 }
 0x149   : > { %p289_p4 = pneg %p288_p9 }
 0x14b   : > { %448 = dma.done.wait (%p289_p4), %s204_s6, 128  }
 0x14c   : > { %450 = vsyncadd (%p289_p4), %s204_s6, 4294967168  ;;  %p19_p5 = scmp.ge.s32.totalorder %s539_s20, 6   ;;  %s707_s12 = smov %s457_s13 }
 0x14d   : > { %s708_s13 = smov %s461_s14  ;;  %s709_s14 = smov %s587_s15 }
 0x14e   : > { %s710_s15 = smov %s469_s16  ;;  %s711_s16 = smov %s473_s17 }
 0x14f   : > { %s712_s17 = smov %s550_s23  ;;  %s713_s0 = smov %s539_s20 }
 0x150   :  { %21 = sbr.rel (!%p19_p5) target bundleno = 12 (0xc), region = 77 }
 0x155   :  { %209 = vsyncpa [#allocation6], 1 }
 0x156   :  { %211 = vsyncpa [#allocation6 + $0x1], 1 }
 0x157   :  { %212 = vsyncpa [#allocation7], 1 }
 0x158   :  { %214 = vsyncpa [#allocation7 + $0x1], 1 }

</bundles_post_ra>
